<compile_context>
chip_gen: v7x
topology: tpu7x:2x2x1
jax: 0.10.0
libtpu: 0.0.40
codegen_flags: <defaults>
</compile_context>

<pallas_src>
from functools import lru_cache
import itertools

import numpy as np
import jax
import jax.numpy as jnp
from jax.experimental import pallas as pl
from jax.experimental.pallas import tpu as pltpu

INIT_DIM = 8
PLANES = (8, 32, 128, 256, 256, 128, 32, 8)

TROW = 512                     # max row tile (keeps row tiles available for megacore at real sizes)
ROW_ALIGN = 32                 # row padding granularity (multiple of the bf16 sublane tile)
VMEM_BUDGET = 8 * 1024 * 1024  # conservative per-call working set (<= half of v5e's 16 MiB scoped default)


def _round_up(x, m):
    return -(-x // m) * m


# ----------------------------------------------------------------------------
# Pallas sparse-conv GEMM kernels (trace-time specialization of the epilogue)
# ----------------------------------------------------------------------------
def _sparse_conv_kernel_single(relu, has_bias, has_res):
    """Whole K*cin contraction in one MXU pass: no scratch, no reduction grid."""
    def kernel(*refs):
        x_ref, w_ref = refs[0], refs[1]
        pos = 2
        bias_ref = refs[pos] if has_bias else None
        pos += int(has_bias)
        res_ref = refs[pos] if has_res else None
        pos += int(has_res)
        o_ref = refs[pos]

        y = jnp.dot(x_ref[...], w_ref[...], preferred_element_type=jnp.float32)
        if has_bias:
            y = y + bias_ref[...]
        if has_res:
            y = y + res_ref[...].astype(jnp.float32)
        if relu:
            y = jnp.maximum(y, 0.0)
        o_ref[...] = y.astype(o_ref.dtype)

    return kernel


def _sparse_conv_kernel_multi(relu, has_bias, has_res):
    """Tiled reduction over K*cin with an f32 VMEM accumulator; fused epilogue."""
    def kernel(*refs):
        x_ref, w_ref = refs[0], refs[1]
        pos = 2
        bias_ref = refs[pos] if has_bias else None
        pos += int(has_bias)
        res_ref = refs[pos] if has_res else None
        pos += int(has_res)
        o_ref, acc_ref = refs[pos], refs[pos + 1]

        k = pl.program_id(1)

        @pl.when(k == 0)
        def _():
            acc_ref[...] = jnp.zeros_like(acc_ref)

        acc_ref[...] += jnp.dot(x_ref[...], w_ref[...],
                                preferred_element_type=jnp.float32)

        @pl.when(k == pl.num_programs(1) - 1)
        def _():
            y = acc_ref[...]
            if has_bias:
                y = y + bias_ref[...]
            if has_res:
                y = y + res_ref[...].astype(jnp.float32)
            if relu:
                y = jnp.maximum(y, 0.0)
            o_ref[...] = y.astype(o_ref.dtype)

    return kernel


@lru_cache(maxsize=None)
def _make_sparse_conv_call(n_rows, kc_pad, cout, tn, tk, relu, has_bias, has_res,
                           out_dtype_name):
    out_dtype = jnp.dtype(out_dtype_name)
    if tk == kc_pad:
        # Single reduction step: 1-D row grid, direct store (no scratch roundtrip).
        kernel = _sparse_conv_kernel_single(relu, has_bias, has_res)
        in_specs = [pl.BlockSpec((tn, kc_pad), lambda i: (i, 0)),
                    pl.BlockSpec((kc_pad, cout), lambda i: (0, 0))]
        if has_bias:
            in_specs.append(pl.BlockSpec((1, cout), lambda i: (0, 0)))
        if has_res:
            in_specs.append(pl.BlockSpec((tn, cout), lambda i: (i, 0)))
        return pl.pallas_call(
            kernel,
            out_shape=jax.ShapeDtypeStruct((n_rows, cout), out_dtype),
            grid=(n_rows // tn,),
            in_specs=in_specs,
            out_specs=pl.BlockSpec((tn, cout), lambda i: (i, 0)),
            compiler_params=pltpu.CompilerParams(dimension_semantics=("parallel",)),
        )

    kernel = _sparse_conv_kernel_multi(relu, has_bias, has_res)
    in_specs = [pl.BlockSpec((tn, tk), lambda i, k: (i, k)),
                pl.BlockSpec((tk, cout), lambda i, k: (k, 0))]
    if has_bias:
        in_specs.append(pl.BlockSpec((1, cout), lambda i, k: (0, 0)))
    if has_res:
        in_specs.append(pl.BlockSpec((tn, cout), lambda i, k: (i, 0)))
    return pl.pallas_call(
        kernel,
        out_shape=jax.ShapeDtypeStruct((n_rows, cout), out_dtype),
        grid_spec=pltpu.PrefetchScalarGridSpec(
            num_scalar_prefetch=0,
            grid=(n_rows // tn, kc_pad // tk),
            in_specs=in_specs,
            out_specs=pl.BlockSpec((tn, cout), lambda i, k: (i, 0)),
            scratch_shapes=[pltpu.VMEM((tn, cout), jnp.float32)],
        ),
        compiler_params=pltpu.CompilerParams(
            dimension_semantics=("parallel", "arbitrary")),
    )


def _choose_k_tiling(kc, tn, cout):
    """(padded K*cin length, reduction tile), VMEM-budget aware.

    Prefers a single MXU pass; otherwise the largest multiple-of-128 tile under the
    budget, preferring an exact divisor of the padded contraction (zero wasted MACs).
    """
    if kc <= 128:
        return kc, kc
    kc128 = _round_up(kc, 128)
    fixed = 12 * tn * cout                         # f32 acc + double-buffered bf16 out + residual

    def fits(tk):
        # double-buffered bf16 x block + w block
        return 4 * tk * (tn + cout) + fixed <= VMEM_BUDGET

    if fits(kc128):
        return kc128, kc128
    tk_max = 128
    while fits(tk_max + 128):
        tk_max += 128
    divisors = [t for t in range(128, tk_max + 1, 128) if kc128 % t == 0]
    best_div = max(divisors) if divisors else 128
    pad_steps = -(-kc128 // tk_max)
    if kc128 // best_div <= pad_steps + 1:         # at most one extra step -> no-waste tiling wins
        return kc128, best_div
    return _round_up(kc, tk_max), tk_max


def sparse_conv(feats, w, idx, *, relu, bias=None, residual=None,
                out_dtype=jnp.bfloat16):
    """ME-style sparse convolution.

    Gather (XLA, sentinel-zero row for missing neighbours -> no mask tensor) followed by
    one Pallas GEMM with the folded K*cin contraction.  BatchNorm (identity in eval mode),
    bias, residual-add and ReLU are fused into the kernel epilogue.
    """
    K, cin, cout = (int(s) for s in w.shape)
    kc = K * cin
    if idx is None:                       # 1x1 conv at the same level: identity map
        n_out = int(feats.shape[0])
        x = feats.astype(jnp.bfloat16)
    else:
        n_out = int(idx.shape[0])
        x = jnp.take(feats.astype(jnp.bfloat16), idx, axis=0).reshape(n_out, kc)
    wf = w.astype(jnp.bfloat16).reshape(kc, cout)

    tn = min(TROW, n_out)
    kc_pad, tk = _choose_k_tiling(kc, tn, cout)
    if kc_pad != kc:
        x = jnp.pad(x, ((0, 0), (0, kc_pad - kc)))
        wf = jnp.pad(wf, ((0, kc_pad - kc), (0, 0)))

    call = _make_sparse_conv_call(n_out, kc_pad, cout, tn, tk, bool(relu),
                                  bias is not None, residual is not None,
                                  jnp.dtype(out_dtype).name)
    args = [x, wf]
    if bias is not None:
        args.append(bias.astype(jnp.float32))
    if residual is not None:
        args.append(residual.astype(jnp.bfloat16))
    return call(*args)


# ----------------------------------------------------------------------------
# Small tiled elementwise Pallas kernel for coordinate (de)quantization
# ----------------------------------------------------------------------------
def _scale_kernel_factory(op):
    def kernel(x_ref, s_ref, o_ref):
        if op == "div":
            o_ref[...] = x_ref[...] / s_ref[...]
        else:
            o_ref[...] = x_ref[...] * s_ref[...]
    return kernel


@lru_cache(maxsize=None)
def _make_scale_call(n_pad, c, rt, op):
    return pl.pallas_call(
        _scale_kernel_factory(op),
        out_shape=jax.ShapeDtypeStruct((n_pad, c), jnp.float32),
        grid=(n_pad // rt,),
        in_specs=[pl.BlockSpec((rt, c), lambda i: (i, 0)),
                  pl.BlockSpec((1, c), lambda i: (0, 0))],
        out_specs=pl.BlockSpec((rt, c), lambda i: (i, 0)),
        compiler_params=pltpu.CompilerParams(dimension_semantics=("parallel",)),
    )


def pallas_scale(x, s, op):
    n, c = int(x.shape[0]), int(x.shape[1])
    if n <= 4096:
        n_pad = _round_up(n, 8)
        rt = n_pad
    else:
        n_pad = _round_up(n, 1024)
        rt = 1024
    xp = x.astype(jnp.float32)
    if n_pad != n:
        xp = jnp.pad(xp, ((0, n_pad - n), (0, 0)))
    out = _make_scale_call(n_pad, c, rt, op)(xp, s.reshape(1, c).astype(jnp.float32))
    return out[:n]


# ----------------------------------------------------------------------------
# Host-side "coordinate manager" (no Pallas equivalent: hashing / unique)
# ----------------------------------------------------------------------------
def gen_offsets(kernel_size, tensor_stride, transpose=False):
    if kernel_size % 2 == 1:
        r = range(-(kernel_size // 2), kernel_size // 2 + 1)
    else:
        r = range(0, kernel_size)
    offs = [tuple(tensor_stride * o for o in off)
            for off in itertools.product(r, repeat=4)]
    if transpose:
        offs = [tuple(-v for v in off) for off in offs]
    return offs


def pad_rows(m):
    """Pad a voxel count to a row-tile-friendly size with >=1 guaranteed-zero row."""
    need = m + 1
    if need <= TROW:
        return _round_up(need, ROW_ALIGN)
    return _round_up(need, TROW)


def build_kernel_map(in_coords, out_coords, offsets, n_out_pad, sentinel):
    """Vectorized (encode + sort + searchsorted) ME-style kernel map.

    Returns int32 [n_out_pad, K]: for each output voxel and kernel offset, the row of the
    neighbour in the input level, or `sentinel` (the input level's first all-zero pad row)
    when the neighbour does not exist.
    """
    inc = np.asarray(in_coords, np.int64)
    outc = np.asarray(out_coords, np.int64)
    offs = np.asarray(offsets, np.int64)                       # [K, 4]
    K, M = offs.shape[0], outc.shape[0]

    lo = np.minimum(inc.min(0),
                    np.concatenate([[outc[:, 0].min()], outc[:, 1:].min(0) + offs.min(0)]))
    hi = np.maximum(inc.max(0),
                    np.concatenate([[outc[:, 0].max()], outc[:, 1:].max(0) + offs.max(0)]))
    dims = (hi - lo + 1).astype(np.int64)
    strides = np.ones(5, np.int64)
    for d in range(3, -1, -1):
        strides[d] = strides[d + 1] * dims[d + 1]

    def enc(c):
        return ((c - lo) * strides).sum(-1)

    in_keys = enc(inc)
    order = np.argsort(in_keys, kind="stable").astype(np.int64)
    skeys = in_keys[order]
    out_keys = enc(outc)                                       # [M]
    deltas = (offs * strides[1:]).sum(-1)                      # [K]
    qk = (out_keys[None, :] + deltas[:, None]).ravel()         # [K*M]

    pos = np.searchsorted(skeys, qk)
    pos = np.minimum(pos, skeys.shape[0] - 1)
    found = skeys[pos] == qk
    idx = np.where(found, order[pos], sentinel).astype(np.int32).reshape(K, M)

    full = np.full((n_out_pad, K), sentinel, np.int32)
    full[:M, :] = idx.T
    return jnp.asarray(full)


def downsample_coords(coords, new_stride):
    q = np.asarray(coords, np.int64).copy()
    q[:, 1:] = (q[:, 1:] // new_stride) * new_stride
    return np.unique(q, axis=0)


def build_all_maps(L1):
    L2 = downsample_coords(L1, 2)
    L4 = downsample_coords(L2, 4)
    L8 = downsample_coords(L4, 8)
    L16 = downsample_coords(L8, 16)
    levels = {1: np.asarray(L1, np.int64), 2: L2, 4: L4, 8: L8, 16: L16}
    m = {s: int(len(v)) for s, v in levels.items()}
    npad = {s: pad_rows(m[s]) for s in levels}

    def kmap(s_in, s_out, offsets):
        return build_kernel_map(levels[s_in], levels[s_out], offsets,
                                npad[s_out], m[s_in])

    maps = {
        "k5_L1": kmap(1, 1, gen_offsets(5, 1)),
        "k3_L1": kmap(1, 1, gen_offsets(3, 1)),
        "k3_L2": kmap(2, 2, gen_offsets(3, 2)),
        "k3_L4": kmap(4, 4, gen_offsets(3, 4)),
        "k3_L8": kmap(8, 8, gen_offsets(3, 8)),
        "k3_L16": kmap(16, 16, gen_offsets(3, 16)),
        "conv1": kmap(1, 2, gen_offsets(2, 1)),
        "conv2": kmap(2, 4, gen_offsets(2, 2)),
        "conv3": kmap(4, 8, gen_offsets(2, 4)),
        "conv4": kmap(8, 16, gen_offsets(2, 8)),
        "convtr4": kmap(16, 8, gen_offsets(2, 8, True)),
        "convtr5": kmap(8, 4, gen_offsets(2, 4, True)),
        "convtr6": kmap(4, 2, gen_offsets(2, 2, True)),
        "convtr7": kmap(2, 1, gen_offsets(2, 1, True)),
    }
    return maps, npad[1], m[1]


# ----------------------------------------------------------------------------
# MinkUNet14 (D=4) parameters + forward
# ----------------------------------------------------------------------------
def init_minkunet14_params(key, in_channels, out_channels):
    keys = iter(jax.random.split(key, 64))

    def conv_w(K, cin, cout):
        std = (2.0 / (K * cin)) ** 0.5
        return jax.random.normal(next(keys), (K, cin, cout), jnp.float32) * std

    def block(cin, cout):
        b = {"conv1": conv_w(81, cin, cout), "conv2": conv_w(81, cout, cout)}
        if cin != cout:
            b["ds"] = conv_w(1, cin, cout)
        return b

    p = {}
    p["conv0"] = conv_w(5 ** 4, in_channels, INIT_DIM)
    p["conv1"] = conv_w(2 ** 4, INIT_DIM, INIT_DIM)
    inp = INIT_DIM
    p["block1"] = block(inp, PLANES[0]); inp = PLANES[0]
    p["conv2"] = conv_w(2 ** 4, inp, inp)
    p["block2"] = block(inp, PLANES[1]); inp = PLANES[1]
    p["conv3"] = conv_w(2 ** 4, inp, inp)
    p["block3"] = block(inp, PLANES[2]); inp = PLANES[2]
    p["conv4"] = conv_w(2 ** 4, inp, inp)
    p["block4"] = block(inp, PLANES[3]); inp = PLANES[3]
    p["convtr4"] = conv_w(2 ** 4, inp, PLANES[4]); inp = PLANES[4] + PLANES[2]
    p["block5"] = block(inp, PLANES[4]); inp = PLANES[4]
    p["convtr5"] = conv_w(2 ** 4, inp, PLANES[5]); inp = PLANES[5] + PLANES[1]
    p["block6"] = block(inp, PLANES[5]); inp = PLANES[5]
    p["convtr6"] = conv_w(2 ** 4, inp, PLANES[6]); inp = PLANES[6] + PLANES[0]
    p["block7"] = block(inp, PLANES[6]); inp = PLANES[6]
    p["convtr7"] = conv_w(2 ** 4, inp, PLANES[7]); inp = PLANES[7] + INIT_DIM
    p["block8"] = block(inp, PLANES[7]); inp = PLANES[7]
    p["final_w"] = conv_w(1, inp, out_channels)
    p["final_b"] = jax.random.normal(next(keys), (1, out_channels), jnp.float32) * 0.01
    return p


def basic_block(x, bp, idx3):
    # conv1 -> BN(id) -> ReLU -> conv2 -> BN(id) -> (+residual) -> ReLU, fully fused.
    residual = sparse_conv(x, bp["ds"], None, relu=False) if "ds" in bp else x
    out = sparse_conv(x, bp["conv1"], idx3, relu=True)
    return sparse_conv(out, bp["conv2"], idx3, relu=True, residual=residual)


def minkunet14_forward(p, x, maps):
    out_p1 = sparse_conv(x, p["conv0"], maps["k5_L1"], relu=True)
    out = sparse_conv(out_p1, p["conv1"], maps["conv1"], relu=True)
    out_b1 = basic_block(out, p["block1"], maps["k3_L2"])
    out = sparse_conv(out_b1, p["conv2"], maps["conv2"], relu=True)
    out_b2 = basic_block(out, p["block2"], maps["k3_L4"])
    out = sparse_conv(out_b2, p["conv3"], maps["conv3"], relu=True)
    out_b3 = basic_block(out, p["block3"], maps["k3_L8"])
    out = sparse_conv(out_b3, p["conv4"], maps["conv4"], relu=True)
    out = basic_block(out, p["block4"], maps["k3_L16"])

    out = sparse_conv(out, p["convtr4"], maps["convtr4"], relu=True)
    out = jnp.concatenate([out, out_b3], axis=1)
    out = basic_block(out, p["block5"], maps["k3_L8"])

    out = sparse_conv(out, p["convtr5"], maps["convtr5"], relu=True)
    out = jnp.concatenate([out, out_b2], axis=1)
    out = basic_block(out, p["block6"], maps["k3_L4"])

    out = sparse_conv(out, p["convtr6"], maps["convtr6"], relu=True)
    out = jnp.concatenate([out, out_b1], axis=1)
    out = basic_block(out, p["block7"], maps["k3_L2"])

    out = sparse_conv(out, p["convtr7"], maps["convtr7"], relu=True)
    out = jnp.concatenate([out, out_p1], axis=1)
    out = basic_block(out, p["block8"], maps["k3_L1"])

    return sparse_conv(out, p["final_w"], None, relu=False,
                       bias=p["final_b"], out_dtype=jnp.float32)


# One jit around the whole network: XLA fuses the gather / pad / concat glue between
# the Pallas GEMM kernels and avoids ~60 separate dispatches.
_forward_jit = jax.jit(minkunet14_forward)


# ----------------------------------------------------------------------------
# MOSModel
# ----------------------------------------------------------------------------
class MOSModelPallas:
    def __init__(self, cfg, n_classes, key):
        ds = cfg["DATA"]["VOXEL_SIZE"]
        dt = cfg["DATA"]["DELTA_T_PRED"]
        self.quantization = jnp.asarray([ds, ds, ds, dt], jnp.float32)
        self.n_classes = n_classes
        self.params = init_minkunet14_params(key, in_channels=1, out_channels=n_classes)

    def __call__(self, past_point_clouds):
        q = self.quantization.reshape(1, 4)
        sizes = [int(pc.shape[0]) for pc in past_point_clouds]

        # 1) quantize coordinates (one tiled Pallas elementwise divide over all clouds)
        pts = jnp.concatenate([pc.astype(jnp.float32) for pc in past_point_clouds], axis=0)
        pts_q = pallas_scale(pts, q, "div")

        # 2) features = 0.5 * ones  |  3) sparse_collate: prepend batch index
        batch_col = jnp.concatenate(
            [jnp.full((n, 1), float(b), jnp.float32) for b, n in enumerate(sizes)], axis=0)
        coords_f = jnp.concatenate([batch_col, pts_q], axis=1)

        # 4) TensorField.sparse() with RANDOM_SUBSAMPLE (host-side voxelization; all point
        #    features equal 0.5 so the random representative choice is value-irrelevant)
        # TODO(synk): ME's hash-based coordinate manager has no Pallas equivalent; numpy host-side.
        coords_np = np.asarray(jax.device_get(coords_f))
        vox_int = np.floor(coords_np).astype(np.int64)
        L1, point2voxel = np.unique(vox_int, axis=0, return_inverse=True)
        point2voxel = np.asarray(point2voxel).reshape(-1).astype(np.int32)

        maps, n1_pad, m1 = build_all_maps(L1)

        vox_feats = jnp.zeros((n1_pad, 1), jnp.float32).at[:m1, :].set(0.5)

        # 5) MinkUNet14 (all sparse convs as Pallas folded-K GEMM kernels) under one jit
        logits_vox = _forward_jit(self.params, vox_feats, maps)

        # 6) slice back to the tensor field (per-point predictions)
        point_logits = logits_vox[jnp.asarray(point2voxel)]

        # 7) out.coordinates[:, 1:] *= quantization (tiled Pallas elementwise multiply)
        xyz_t = pallas_scale(coords_f[:, 1:], q, "mul")
        out_coords = jnp.concatenate([coords_f[:, :1], xyz_t], axis=1)
        return point_logits, out_coords


# ----------------------------------------------------------------------------
if __name__ == "__main__":
    cfg = {"DATA": {"DELTA_T_PRED": 0.1, "VOXEL_SIZE": 0.1}}
    n_classes = 3

    key = jax.random.PRNGKey(0)
    k_model, k_pc0, k_pc1 = jax.random.split(key, 3)

    def make_cloud(k, n):
        kxyz, kt = jax.random.split(k)
        xyz = jax.random.uniform(kxyz, (n, 3), jnp.float32, 0.0, 1.0)
        t = jax.random.randint(kt, (n, 1), 0, 4).astype(jnp.float32) * 0.1
        return jnp.concatenate([xyz, t], axis=1)

    past_point_clouds = [make_cloud(k_pc0, 96), make_cloud(k_pc1, 96)]

    model = MOSModelPallas(cfg, n_classes, k_model)
    point_logits, out_coords = model(past_point_clouds)
    point_logits = jax.block_until_ready(point_logits)
    out_coords = jax.block_until_ready(out_coords)

    assert point_logits.shape == (192, n_classes)
    assert out_coords.shape == (192, 5)
    assert bool(jnp.all(jnp.isfinite(point_logits)))
    assert bool(jnp.all(jnp.isfinite(out_coords)))
    print("KERNEL_OK")
</pallas_src>

<mosaic_0001>
module attributes {stable_mosaic.version = 11 : i64} {
  func.func @kernel(%arg0: i32, %arg1: memref<192x4xf32, #tpu.memory_space<vmem>>, %arg2: memref<1x4xf32, #tpu.memory_space<vmem>>, %arg3: memref<192x4xf32, #tpu.memory_space<vmem>>) attributes {dimension_semantics = [#tpu.dimension_semantics<parallel>], iteration_bounds = array<i64: 1>, scalar_prefetch = 0 : i64, scratch_operands = 0 : i64, tpu.core_type = #tpu.core_type<tc>, window_params = [{transform_indices = @transform_0, window_bounds = array<i64: 192, 4>}, {pipeline_mode = #tpu.pipeline_mode<synchronous>, transform_indices = @transform_1, window_bounds = array<i64: 1, 4>}, {transform_indices = @transform_2, window_bounds = array<i64: 192, 4>}]} {
    %c0 = arith.constant 0 : index
    %c0_0 = arith.constant 0 : index
    %0 = vector.load %arg1[%c0, %c0_0] : memref<192x4xf32, #tpu.memory_space<vmem>>, vector<192x4xf32>
    %c0_1 = arith.constant 0 : index
    %c0_2 = arith.constant 0 : index
    %1 = vector.load %arg2[%c0_1, %c0_2] : memref<1x4xf32, #tpu.memory_space<vmem>>, vector<1x4xf32>
    %2 = vector.broadcast %1 : vector<1x4xf32> to vector<192x4xf32>
    %3 = arith.divf %0, %2 : vector<192x4xf32>
    %c0_3 = arith.constant 0 : index
    %c0_4 = arith.constant 0 : index
    %4 = vector.load %arg3[%c0_3, %c0_4] : memref<192x4xf32, #tpu.memory_space<vmem>>, vector<192x4xf32>
    tpu.vector_store %arg3[%c0_3, %c0_4], %3 {strides = array<i32>} : memref<192x4xf32, #tpu.memory_space<vmem>>, vector<192x4xf32>,
    return
  }
  func.func @transform_0(%arg0: i32) -> (i32, i32) {
    %c0_i32 = arith.constant 0 : i32
    %c0_i32_0 = arith.constant 0 : i32
    return %arg0, %c0_i32 : i32, i32
  }
  func.func @transform_1(%arg0: i32) -> (i32, i32) {
    %c0_i32 = arith.constant 0 : i32
    %c0_i32_0 = arith.constant 0 : i32
    %c0_i32_1 = arith.constant 0 : i32
    return %c0_i32, %c0_i32_0 : i32, i32
  }
  func.func @transform_2(%arg0: i32) -> (i32, i32) {
    %c0_i32 = arith.constant 0 : i32
    %c0_i32_0 = arith.constant 0 : i32
    return %arg0, %c0_i32 : i32, i32
  }
}

</mosaic_0001>

<bundles_post_ra>
// kernel: tpu_custom_call.1
= control target key start
LH: loop header
LB: loop body
LE: loop exit
PB: predicated region body
PF: predicated region fallthrough
CT: control target
= control target key end

     0   :  { %vm67_vm0 = vcmask 31744   ;;  %s285_s1 = inlined_call_operand.vmem [shape: f32[1,4], index: 1, kind: input, shape index: {}]   ;;  %s286_s0 = inlined_call_operand.vmem [shape: f32[192,4], index: 0, kind: input, shape index: {}]   ;;  %s287_s2 = inlined_call_operand.vmem [shape: f32[192,4], index: 2, kind: output, shape index: {}]  }
   0x1   :  { %v96_v0 = vld [vmem:[%s285_s1] ss:$0 sm:$0xff]  ;;  %v12_v2 = vld [vmem:[%s286_s0 + $0x8] sm:$0xff]  ;;  %v13_v3 = vld [vmem:[%s286_s0 + $0x10] sm:$0xff] }
   0x2   :  { %97 = vrcp.f32 %v96_v0  ;;  %v11_v1 = vld [vmem:[%s286_s0] sm:$0xff]  ;;  %v14_v4 = vld [vmem:[%s286_s0 + $0x18] sm:$0xff]  ;;  %v16_v6 = vld [vmem:[%s286_s0 + $0x28] sm:$0xff] }
   0x3   :  { %v15_v5 = vld [vmem:[%s286_s0 + $0x20] sm:$0xff]  ;;  %v17_v7 = vld [vmem:[%s286_s0 + $0x30] sm:$0xff]  ;;  %v18_v8 = vld [vmem:[%s286_s0 + $0x38] sm:$0xff] }
   0x4   :  { %v19_v9 = vld [vmem:[%s286_s0 + $0x40] sm:$0xff]  ;;  %v20_v10 = vld [vmem:[%s286_s0 + $0x48] sm:$0xff]  ;;  %v21_v11 = vld [vmem:[%s286_s0 + $0x50] sm:$0xff] }
   0x5   :  { %v22_v12 = vld [vmem:[%s286_s0 + $0x58] sm:$0xff]  ;;  %v23_v14 = vld [vmem:[%s286_s0 + $0x60] sm:$0xff]  ;;  %v24_v15 = vld [vmem:[%s286_s0 + $0x68] sm:$0xff] }
   0x6   :  { %v25_v16 = vld [vmem:[%s286_s0 + $0x70] sm:$0xff]  ;;  %v26_v21 = vld [vmem:[%s286_s0 + $0x78] sm:$0xff]  ;;  %v27_v22 = vld [vmem:[%s286_s0 + $0x80] sm:$0xff] }
   0x7   :  { %v28_v23 = vld [vmem:[%s286_s0 + $0x88] sm:$0xff]  ;;  %v29_v28 = vld [vmem:[%s286_s0 + $0x90] sm:$0xff]  ;;  %v30_v29 = vld [vmem:[%s286_s0 + $0x98] sm:$0xff] }
   0x8   :  { %v31_v30 = vld [vmem:[%s286_s0 + $0xa0] sm:$0xff]  ;;  %v32_v35 = vld [vmem:[%s286_s0 + $0xa8] sm:$0xff]  ;;  %v33_v36 = vld [vmem:[%s286_s0 + $0xb0] sm:$0xff] }
   0x9   :  { %v34_v37 = vld [vmem:[%s286_s0 + $0xb8] sm:$0xff] }
   0xc   :  { %v98_v13 = vpop.eup %97 }
   0xd   :  { %v43_v17 = vmul.f32 %v98_v13, %v11_v1  ;;  %v44_v18 = vmul.f32 %v98_v13, %v12_v2  ;;  %v45_v19 = vmul.f32 %v98_v13, %v13_v3  ;;  %v46_v20 = vmul.f32 %v98_v13, %v14_v4 }
   0xe   :  { %v47_v24 = vmul.f32 %v98_v13, %v15_v5  ;;  %v48_v25 = vmul.f32 %v98_v13, %v16_v6  ;;  %v49_v26 = vmul.f32 %v98_v13, %v17_v7  ;;  %v50_v27 = vmul.f32 %v98_v13, %v18_v8 }
   0xf   :  { %68 = vst.msk [vmem:[%s287_s2] sm:$0xff] %vm67_vm0, %v43_v17  ;;  %69 = vst.msk [vmem:[%s287_s2 + $0x8] sm:$0xff] %vm67_vm0, %v44_v18  ;;  %v51_v31 = vmul.f32 %v98_v13, %v19_v9  ;;  %v52_v32 = vmul.f32 %v98_v13, %v20_v10  ;;  %v53_v33 = vmul.f32 %v98_v13, %v21_v11 }
  0x10   :  { %70 = vst.msk [vmem:[%s287_s2 + $0x10] sm:$0xff] %vm67_vm0, %v45_v19  ;;  %71 = vst.msk [vmem:[%s287_s2 + $0x18] sm:$0xff] %vm67_vm0, %v46_v20  ;;  %v54_v34 = vmul.f32 %v98_v13, %v22_v12  ;;  %v55_v38 = vmul.f32 %v98_v13, %v23_v14  ;;  %v56_v39 = vmul.f32 %v98_v13, %v24_v15 }
  0x11   :  { %72 = vst.msk [vmem:[%s287_s2 + $0x20] sm:$0xff] %vm67_vm0, %v47_v24  ;;  %73 = vst.msk [vmem:[%s287_s2 + $0x28] sm:$0xff] %vm67_vm0, %v48_v25  ;;  %v57_v40 = vmul.f32 %v98_v13, %v25_v16  ;;  %v58_v41 = vmul.f32 %v98_v13, %v26_v21  ;;  %v59_v42 = vmul.f32 %v98_v13, %v27_v22 }
  0x12   :  { %74 = vst.msk [vmem:[%s287_s2 + $0x30] sm:$0xff] %vm67_vm0, %v49_v26  ;;  %75 = vst.msk [vmem:[%s287_s2 + $0x38] sm:$0xff] %vm67_vm0, %v50_v27  ;;  %v60_v43 = vmul.f32 %v98_v13, %v28_v23  ;;  %v61_v44 = vmul.f32 %v98_v13, %v29_v28  ;;  %v62_v45 = vmul.f32 %v98_v13, %v30_v29 }
  0x13   :  { %76 = vst.msk [vmem:[%s287_s2 + $0x40] sm:$0xff] %vm67_vm0, %v51_v31  ;;  %77 = vst.msk [vmem:[%s287_s2 + $0x48] sm:$0xff] %vm67_vm0, %v52_v32  ;;  %v63_v46 = vmul.f32 %v98_v13, %v31_v30  ;;  %v64_v47 = vmul.f32 %v98_v13, %v32_v35  ;;  %v65_v48 = vmul.f32 %v98_v13, %v33_v36 }
  0x14   :  { %78 = vst.msk [vmem:[%s287_s2 + $0x50] sm:$0xff] %vm67_vm0, %v53_v33  ;;  %79 = vst.msk [vmem:[%s287_s2 + $0x58] sm:$0xff] %vm67_vm0, %v54_v34  ;;  %v66_v49 = vmul.f32 %v98_v13, %v34_v37 }
  0x15   :  { %80 = vst.msk [vmem:[%s287_s2 + $0x60] sm:$0xff] %vm67_vm0, %v55_v38  ;;  %81 = vst.msk [vmem:[%s287_s2 + $0x68] sm:$0xff] %vm67_vm0, %v56_v39 }
  0x16   :  { %82 = vst.msk [vmem:[%s287_s2 + $0x70] sm:$0xff] %vm67_vm0, %v57_v40  ;;  %83 = vst.msk [vmem:[%s287_s2 + $0x78] sm:$0xff] %vm67_vm0, %v58_v41 }
  0x17   :  { %84 = vst.msk [vmem:[%s287_s2 + $0x80] sm:$0xff] %vm67_vm0, %v59_v42  ;;  %85 = vst.msk [vmem:[%s287_s2 + $0x88] sm:$0xff] %vm67_vm0, %v60_v43 }
  0x18   :  { %86 = vst.msk [vmem:[%s287_s2 + $0x90] sm:$0xff] %vm67_vm0, %v61_v44  ;;  %87 = vst.msk [vmem:[%s287_s2 + $0x98] sm:$0xff] %vm67_vm0, %v62_v45 }
  0x19   :  { %88 = vst.msk [vmem:[%s287_s2 + $0xa0] sm:$0xff] %vm67_vm0, %v63_v46  ;;  %89 = vst.msk [vmem:[%s287_s2 + $0xa8] sm:$0xff] %vm67_vm0, %v64_v47 }
  0x1a   :  { %90 = vst.msk [vmem:[%s287_s2 + $0xb0] sm:$0xff] %vm67_vm0, %v65_v48  ;;  %91 = vst.msk [vmem:[%s287_s2 + $0xb8] sm:$0xff] %vm67_vm0, %v66_v49 }

</bundles_post_ra>
